<compile_context>
chip_gen: v6e
topology: v6e:2x2x1
jax: 0.10.0
libtpu: 0.0.40
codegen_flags: <defaults>
</compile_context>

<pallas_src>
import functools

import jax
import jax.numpy as jnp
from jax.experimental import pallas as pl
from jax.experimental.pallas import tpu as pltpu


def _round_up(n, m):
    return ((n + m - 1) // m) * m


def _mlp_kernel(x_ref, w0_ref, b0_ref, w1_ref, b1_ref, o_ref, *,
                training: bool, keep_threshold_24: int, seed_mix: int,
                block_b: int):
    # ---- linear0 : MXU matmul (bf16 operands, f32 accumulation) ----
    h = jnp.dot(x_ref[...], w0_ref[...], preferred_element_type=jnp.float32)
    h = jnp.maximum(h + b0_ref[...], 0.0)           # bias + ReLU in f32 (VPU)

    if training:
        # Inverted dropout with PyTorch semantics (drop prob p); the 1/(1-p)
        # survivor scale is folded into w1 by the wrapper, so the kernel only
        # zeroes dropped elements.  Random bits come from a stateless
        # lowbias32 hash of the global element index mixed with the seed:
        # portable (no TPU-only PRNG primitives) and decorrelated per batch
        # tile via pl.program_id(0).
        # TODO(synk): on real TPU hardware pltpu.prng_random_bits is slightly
        # cheaper, but it has no interpret/CPU lowering, so the hash is used
        # everywhere for portability.
        rows = jax.lax.broadcasted_iota(jnp.int32, h.shape, 0)
        cols = jax.lax.broadcasted_iota(jnp.int32, h.shape, 1)
        gidx = (rows + pl.program_id(0) * block_b) * h.shape[1] + cols
        key = gidx.astype(jnp.uint32) + jnp.uint32(seed_mix)
        key = key ^ (key >> 16)
        key = key * jnp.uint32(0x7FEB352D)
        key = key ^ (key >> 15)
        key = key * jnp.uint32(0x846CA68B)
        key = key ^ (key >> 16)
        r24 = (key >> 8).astype(jnp.int32)            # uniform in [0, 2^24)
        keep = r24 >= jnp.int32(keep_threshold_24)    # P(drop) = p
        h = jnp.where(keep, h, 0.0)
    # eval mode: dropout is identity (same as module.eval() in PyTorch)

    # ---- linear1 : MXU matmul (bf16 operands, f32 accumulation) ----
    out = jnp.dot(h.astype(w1_ref.dtype), w1_ref[...],
                  preferred_element_type=jnp.float32)
    o_ref[...] = (out + b1_ref[...]).astype(o_ref.dtype)


def _vmem_limit_bytes():
    # Raise the scoped-VMEM limit above the conservative default while leaving
    # headroom: v5e/v6e (128 MiB physical) -> 96 MiB, v7x (64 MiB) -> 48 MiB.
    try:
        cap = pltpu.get_tpu_info().vmem_capacity_bytes
    except Exception:
        return None
    return min(cap * 3 // 4, 100 << 20)


def two_layer_nn(x, w0, b0, w1, b1, *, seed=0, training=False, p=0.2,
                 block_b=None, compute_dtype=jnp.bfloat16, out_dtype=None):
    """Fused two-layer MLP forward.  x: (B, D_in) -> (B, D_out).

    w0: (D_in, H), b0: (H,), w1: (H, D_out), b1: (D_out,)
    (weights are transposed relative to PyTorch's nn.Linear storage).
    """
    B, D_in = x.shape
    H = w0.shape[1]
    D_out = w1.shape[1]
    out_dtype = x.dtype if out_dtype is None else out_dtype

    # Lane-dense hidden dimension (multiple of 128).  Zero-padding is exact:
    # padded hidden columns are ReLU(0 + 0) = 0 and w1's padded rows are 0.
    H_p = _round_up(H, 128)

    if block_b is None:
        # >= ~4 grid steps for DMA/compute overlap + megacore sharding,
        # capped at 256 rows (MXU/VMEM friendly on v6e/v7x, near the HBM
        # roofline on v5e), floored at 8 sublanes.
        block_b = min(256, max(8, _round_up(pl.cdiv(B, 4), 8)))
    grid_b = pl.cdiv(B, block_b)   # partial last block handled by Pallas

    inv_keep = 1.0 / (1.0 - float(p))
    keep_threshold_24 = min(int(round(float(p) * (1 << 24))), (1 << 24) - 1)
    seed_mix = (int(seed) * 0x9E3779B1 + 0x85EBCA6B) & 0xFFFFFFFF

    # One-time host-side prep (all small except x's dtype cast):
    #   * x cast to the compute dtype so the kernel streams half the bytes,
    #   * weights/biases zero-padded on the hidden axis only,
    #   * dropout survivor scale folded into w1 when training.
    x_c = x if x.dtype == compute_dtype else x.astype(compute_dtype)
    w0p = jnp.pad(w0, ((0, 0), (0, H_p - H))).astype(compute_dtype)
    b0p = jnp.pad(b0, (0, H_p - H)).astype(jnp.float32).reshape(1, H_p)
    w1f = jnp.pad(w1.astype(jnp.float32), ((0, H_p - H), (0, 0)))
    if training:
        w1f = w1f * jnp.float32(inv_keep)
    w1p = w1f.astype(compute_dtype)
    b1p = b1.astype(jnp.float32).reshape(1, D_out)

    kernel = functools.partial(
        _mlp_kernel, training=bool(training),
        keep_threshold_24=keep_threshold_24, seed_mix=seed_mix,
        block_b=int(block_b))

    params = {"dimension_semantics": ("parallel",)}
    vmem_limit = _vmem_limit_bytes()
    if vmem_limit is not None:
        params["vmem_limit_bytes"] = vmem_limit
    compiler_params = pltpu.CompilerParams(**params)

    # TODO(synk): for very large D_in / H (resident bf16 weights approaching
    # the v7x 48 MiB scoped-VMEM budget) add an "arbitrary" contraction grid
    # axis with an f32 accumulator scratch so the weights stream over K
    # instead of staying fully resident.
    return pl.pallas_call(
        kernel,
        out_shape=jax.ShapeDtypeStruct((B, D_out), out_dtype),
        grid=(grid_b,),
        in_specs=[
            pl.BlockSpec((block_b, D_in), lambda i: (i, 0)),  # x tile (streamed)
            pl.BlockSpec((D_in, H_p), lambda i: (0, 0)),      # w0 (resident)
            pl.BlockSpec((1, H_p), lambda i: (0, 0)),         # b0
            pl.BlockSpec((H_p, D_out), lambda i: (0, 0)),     # w1 (resident)
            pl.BlockSpec((1, D_out), lambda i: (0, 0)),       # b1
        ],
        out_specs=pl.BlockSpec((block_b, D_out), lambda i: (i, 0)),
        compiler_params=compiler_params,
    )(x_c, w0p, b0p, w1p, b1p)


def init_params(key, input_dim, hidden_dim, output_dim, dtype=jnp.float32):
    """Deterministic init mirroring the PyTorch module's __init__."""
    k0, k1, k2, k3 = jax.random.split(key, 4)
    # linear0.weight: kaiming_normal_ (fan_in, gain=sqrt(2)) -> std=sqrt(2/fan_in)
    w0 = jax.random.normal(k0, (input_dim, hidden_dim), dtype) * jnp.sqrt(
        jnp.asarray(2.0 / input_dim, dtype))
    # linear0.bias: PyTorch default uniform(-1/sqrt(fan_in), 1/sqrt(fan_in))
    bound0 = 1.0 / (input_dim ** 0.5)
    b0 = jax.random.uniform(k1, (hidden_dim,), dtype, -bound0, bound0)
    # linear1.weight & bias: PyTorch default uniform(-1/sqrt(hidden), 1/sqrt(hidden))
    bound1 = 1.0 / (hidden_dim ** 0.5)
    w1 = jax.random.uniform(k2, (hidden_dim, output_dim), dtype, -bound1, bound1)
    b1 = jax.random.uniform(k3, (output_dim,), dtype, -bound1, bound1)
    return w0, b0, w1, b1


if __name__ == "__main__":
    # Small, deliberately non-128-multiple dims: exercises the padded hidden
    # axis, the unpadded feature/output dims, and the partial last batch tile.
    batch, input_dim, hidden_dim, output_dim = 300, 96, 200, 48

    root = jax.random.PRNGKey(0)
    kx, kp = jax.random.split(root)
    x = jax.random.normal(kx, (batch, input_dim), jnp.float32)
    w0, b0, w1, b1 = init_params(kp, input_dim, hidden_dim, output_dim)

    # Eval mode (dropout = identity): default block_b -> 4 grid steps.
    out = two_layer_nn(x, w0, b0, w1, b1, training=False)
    out = jax.block_until_ready(out)

    # Pure-JAX f32 reference; kernel uses bf16 MXU operands with f32
    # accumulation, so allow a small tolerance.
    ref = jnp.maximum(x @ w0 + b0, 0.0) @ w1 + b1
    assert out.shape == (batch, output_dim)
    assert jnp.allclose(out, ref, atol=5e-2, rtol=5e-2), "mismatch vs reference"

    # Training mode: exercises the fused hash-based dropout path.
    out_tr = two_layer_nn(x, w0, b0, w1, b1, training=True, seed=123)
    out_tr = jax.block_until_ready(out_tr)
    assert out_tr.shape == (batch, output_dim)
    assert bool(jnp.isfinite(out_tr).all()), "non-finite values in training out"
    assert float(jnp.max(jnp.abs(out_tr - out))) > 1e-3, "dropout had no effect"

    print("KERNEL_OK")
</pallas_src>

<mosaic_0001>
module attributes {stable_mosaic.version = 11 : i64} {
  func.func @_mlp_kernel(%arg0: i32, %arg1: memref<80x96xbf16, #tpu.memory_space<vmem>>, %arg2: memref<96x256xbf16, #tpu.memory_space<vmem>>, %arg3: memref<1x256xf32, #tpu.memory_space<vmem>>, %arg4: memref<256x48xbf16, #tpu.memory_space<vmem>>, %arg5: memref<1x48xf32, #tpu.memory_space<vmem>>, %arg6: memref<80x48xf32, #tpu.memory_space<vmem>>) attributes {dimension_semantics = [#tpu.dimension_semantics<parallel>], iteration_bounds = array<i64: 4>, scalar_prefetch = 0 : i64, scratch_operands = 0 : i64, tpu.core_type = #tpu.core_type<tc>, window_params = [{transform_indices = @transform_0, window_bounds = array<i64: 80, 96>}, {pipeline_mode = #tpu.pipeline_mode<synchronous>, transform_indices = @transform_1, window_bounds = array<i64: 96, 256>}, {pipeline_mode = #tpu.pipeline_mode<synchronous>, transform_indices = @transform_2, window_bounds = array<i64: 1, 256>}, {pipeline_mode = #tpu.pipeline_mode<synchronous>, transform_indices = @transform_3, window_bounds = array<i64: 256, 48>}, {pipeline_mode = #tpu.pipeline_mode<synchronous>, transform_indices = @transform_4, window_bounds = array<i64: 1, 48>}, {transform_indices = @transform_5, window_bounds = array<i64: 80, 48>}]} {
    %c0 = arith.constant 0 : index
    %c0_0 = arith.constant 0 : index
    %0 = vector.load %arg1[%c0, %c0_0] : memref<80x96xbf16, #tpu.memory_space<vmem>>, vector<80x96xbf16>
    %c0_1 = arith.constant 0 : index
    %c0_2 = arith.constant 0 : index
    %1 = vector.load %arg2[%c0_1, %c0_2] : memref<96x256xbf16, #tpu.memory_space<vmem>>, vector<96x256xbf16>
    %cst = arith.constant dense<0.000000e+00> : vector<80x256xf32>
    %2 = tpu.matmul %0, %1, %cst {dimension_numbers = #tpu.dot_dimension_numbers<[1], [0], [0], [1], [0, 0, 1, 1], [], []>} : vector<80x96xbf16>, vector<96x256xbf16>, vector<80x256xf32> -> vector<80x256xf32>
    %c0_3 = arith.constant 0 : index
    %c0_4 = arith.constant 0 : index
    %3 = vector.load %arg3[%c0_3, %c0_4] : memref<1x256xf32, #tpu.memory_space<vmem>>, vector<1x256xf32>
    %4 = vector.broadcast %3 : vector<1x256xf32> to vector<80x256xf32>
    %5 = arith.addf %2, %4 : vector<80x256xf32>
    %cst_5 = arith.constant 0.000000e+00 : f32
    %6 = vector.broadcast %cst_5 : f32 to vector<80x256xf32>
    %7 = arith.maximumf %5, %6 : vector<80x256xf32>
    %8 = arith.truncf %7 : vector<80x256xf32> to vector<80x256xbf16>
    %c0_6 = arith.constant 0 : index
    %c0_7 = arith.constant 0 : index
    %9 = vector.load %arg4[%c0_6, %c0_7] : memref<256x48xbf16, #tpu.memory_space<vmem>>, vector<256x48xbf16>
    %cst_8 = arith.constant dense<0.000000e+00> : vector<80x48xf32>
    %10 = tpu.matmul %8, %9, %cst_8 {dimension_numbers = #tpu.dot_dimension_numbers<[1], [0], [0], [1], [0, 0, 1, 1], [], []>} : vector<80x256xbf16>, vector<256x48xbf16>, vector<80x48xf32> -> vector<80x48xf32>
    %c0_9 = arith.constant 0 : index
    %c0_10 = arith.constant 0 : index
    %11 = vector.load %arg5[%c0_9, %c0_10] : memref<1x48xf32, #tpu.memory_space<vmem>>, vector<1x48xf32>
    %12 = vector.broadcast %11 : vector<1x48xf32> to vector<80x48xf32>
    %13 = arith.addf %10, %12 : vector<80x48xf32>
    %c0_11 = arith.constant 0 : index
    %c0_12 = arith.constant 0 : index
    %14 = vector.load %arg6[%c0_11, %c0_12] : memref<80x48xf32, #tpu.memory_space<vmem>>, vector<80x48xf32>
    tpu.vector_store %arg6[%c0_11, %c0_12], %13 {strides = array<i32>} : memref<80x48xf32, #tpu.memory_space<vmem>>, vector<80x48xf32>,
    return
  }
  func.func @transform_0(%arg0: i32) -> (i32, i32) {
    %c0_i32 = arith.constant 0 : i32
    %c0_i32_0 = arith.constant 0 : i32
    return %arg0, %c0_i32 : i32, i32
  }
  func.func @transform_1(%arg0: i32) -> (i32, i32) {
    %c0_i32 = arith.constant 0 : i32
    %c0_i32_0 = arith.constant 0 : i32
    %c0_i32_1 = arith.constant 0 : i32
    return %c0_i32, %c0_i32_0 : i32, i32
  }
  func.func @transform_2(%arg0: i32) -> (i32, i32) {
    %c0_i32 = arith.constant 0 : i32
    %c0_i32_0 = arith.constant 0 : i32
    %c0_i32_1 = arith.constant 0 : i32
    return %c0_i32, %c0_i32_0 : i32, i32
  }
  func.func @transform_3(%arg0: i32) -> (i32, i32) {
    %c0_i32 = arith.constant 0 : i32
    %c0_i32_0 = arith.constant 0 : i32
    %c0_i32_1 = arith.constant 0 : i32
    return %c0_i32, %c0_i32_0 : i32, i32
  }
  func.func @transform_4(%arg0: i32) -> (i32, i32) {
    %c0_i32 = arith.constant 0 : i32
    %c0_i32_0 = arith.constant 0 : i32
    %c0_i32_1 = arith.constant 0 : i32
    return %c0_i32, %c0_i32_0 : i32, i32
  }
  func.func @transform_5(%arg0: i32) -> (i32, i32) {
    %c0_i32 = arith.constant 0 : i32
    %c0_i32_0 = arith.constant 0 : i32
    return %arg0, %c0_i32 : i32, i32
  }
}

</mosaic_0001>

<bundles_post_ra>
// kernel: tpu_custom_call.1
= control target key start
LH: loop header
LB: loop body
LE: loop exit
PB: predicated region body
PF: predicated region fallthrough
CT: control target
= control target key end

     0   :  { %s1324_s18 = smov 0   ;;  %s1326_s19 = smov 0   ;;  %s1569_s0 = inlined_call_operand.vmem [shape: bf16[300,96], index: 0, kind: input, shape index: {}]   ;;  %s1570_s1 = inlined_call_operand.vmem [shape: bf16[96,256], index: 1, kind: input, shape index: {}]   ;;  %s1571_s2 = inlined_call_operand.vmem [shape: f32[1,256], index: 2, kind: input, shape index: {}]   ;;  %s1572_s3 = inlined_call_operand.vmem [shape: bf16[256,48], index: 3, kind: input, shape index: {}]   ;;  %s1573_s4 = inlined_call_operand.vmem [shape: f32[1,48], index: 4, kind: input, shape index: {}]   ;;  %s1574_s5 = inlined_call_operand.vmem [shape: f32[300,48], index: 5, kind: output, shape index: {}]  }
   0x1   :  { %s1328_s20 = smov 0  }
   0x2 LB: > { %s1337_s21 = sadd.s32 4294967295, %s1259_s20   ;;  %s1339_s22 = sadd.s32 1, %s1259_s20   ;;  %s1259_s20 = sphi %s1328_s20, %s1581_s20   ;;  %s1255_s19 = sphi %s1326_s19, %s1580_s19   ;;  %s1251_s18 = sphi %s1324_s18, %s1579_s18  }
   0x3   : > { %s129_s23 = ssub.s32 %s1259_s20, %s1339_s22  ;;  %s132_s24 = sadd.s32 1, %s1255_s19 }
   0x4   : > { %p130_p0 = scmp.eq.s32.totalorder %s129_s23, 0  ;;  %p142_p1 = scmp.ne.s32.totalorder %s1255_s19, %s1251_s18 }
   0x5   : > { %p143_p2 = scmp.eq.s32.totalorder %s1337_s21, 3  ;;  %p971_p3 = scmp.ge.s32.totalorder %s1259_s20, 1 }
   0x6   : > { %s1347_s25 = scalar_select %p130_p0, %s1255_s19, %s132_s24  }
   0x7   : > { %p1349_p4 = por %p143_p2, %p142_p1  ;;  %p196_p5 = scmp.lt.s32.totalorder %s1259_s20, 5 }
   0x9   : > { %p197_p6 = pnand %p971_p3, %p196_p5 }
   0xa   : > { %s1357_s29 = smul.u32 (!%p197_p6), 10, %s1337_s21 }
   0xb   : > { %200 = sbr.rel (%p197_p6) target bundleno = 536 (0x218), region = 40 }
   0xc   : > { %p232_p7 = scmp.lt.s32.totalorder (!%p197_p6), %s1357_s29, 37 }
  0x10   : > { %v1162_v0 = vld [vmem:[%s1570_s1 + $0x54] ss:$8 sps:$4 sm:$0xff]   ;;  %v1164_v1 = vld [vmem:[%s1570_s1 + $0x50] ss:$8 sps:$4 sm:$0xff]   ;;  %v1293_v2 = vmov 0   ;;  %s233_s13 = scalar_select %p232_p7, %s1357_s29, 37  ;;  %v271_v34 = vlaneseq }
  0x11   : > { %414 = vmatprep.mubr.bf16.mxu0 %v1293_v2  ;;  %386 = vmatprep.subr.bf16.mxu0 %v1162_v0  ;;  %v1165_v3 = vld [vmem:[%s1570_s1 + $0x44] ss:$8 sps:$4 sm:$0xff]   ;;  %v1167_v4 = vld [vmem:[%s1570_s1 + $0x40] ss:$8 sps:$4 sm:$0xff]   ;;  %v1168_v5 = vld [vmem:[%s1570_s1 + $0x34] ss:$8 sps:$4 sm:$0xff]  }
  0x12   : > { %387 = vmatpush1.bf16.msra.mxu0 %v1164_v1  ;;  %s972_s14 = sshll.u32 %s233_s13, 2  ;;  %v1170_v6 = vld [vmem:[%s1570_s1 + $0x30] ss:$8 sps:$4 sm:$0xff]   ;;  %v1171_v7 = vld [vmem:[%s1570_s1 + $0x24] ss:$8 sps:$4 sm:$0xff]   ;;  %vm366_vm0 = vcmask 785408  }
  0x13   : > { %388 = vmatprep.subr.bf16.mxu0 %v1165_v3  ;;  %s1379_s23 = scalar_lea.vmem %s1569_s0, %s972_s14  ;;  %v1173_v8 = vld [vmem:[%s1570_s1 + $0x20] ss:$8 sps:$4 sm:$0xff]   ;;  %v1174_v9 = vld [vmem:[%s1570_s1 + $0x14] ss:$8 sps:$4 sm:$0xff]   ;;  %v1176_v10 = vld [vmem:[%s1570_s1 + $0x10] ss:$8 sps:$4 sm:$0xff]  }
  0x14   : > { %v1185_v11 = vld [vmem:[%s1572_s3 + $0x78] sm:$0xff]   ;;  %v1177_v12 = vld [vmem:[%s1570_s1 + $0x4] ss:$8 sps:$4 sm:$0xff]   ;;  %v1187_v14 = vld [vmem:[%s1572_s3 + $0x70] sm:$0xff]   ;;  %v272_v35 = vshrl.u32 %v271_v34, 7  ;;  %s224_s13 = sand.u32 1, %s1251_s18  }
  0x15   : > { %v1186_v13 = vld [vmem:[%s1572_s3 + $0x38] sm:$0xff]   ;;  %1025 = vmatprep.subr.bf16.mxu1 %v1185_v11  ;;  %v1188_v15 = vld [vmem:[%s1572_s3 + $0x30] sm:$0xff]   ;;  %v1189_v16 = vld [vmem:[%s1572_s3 + $0x68] sm:$0xff]   ;;  %s1071_s14 = smul.u32 80, %s224_s13  ;;  %vm703_vm1 = vcmask 392192   ;;  %s722_s18 = ssub.s32 (%p1349_p4), 38, %s1357_s29 }
  0x16   : > { %389 = vmatpush1.bf16.msra.mxu0 %v1167_v4  ;;  %1026 = vmatpush3.bf16.msra.mxu1 %v1186_v13  ;;  %v1179_v17 = vld [vmem:[%s1570_s1] ss:$8 sps:$4 sm:$0xff]   ;;  %v1193_v22 = vld [vmem:[%s1572_s3 + $0x58] sm:$0xff]   ;;  %v1182_v25 = vld [vmem:[%s1379_s23 + $0x10] sm:$0xff]   ;;  %v277_v36 = vsub.s32 1, %v272_v35  ;;  %v273_v37 = vsub.s32 0, %v272_v35 }
  0x17   : > { %390 = vmatprep.subr.bf16.mxu0 %v1168_v5  ;;  %1027 = vmatprep.subr.bf16.mxu1 %v1187_v14  ;;  %v1180_v18 = vld [vmem:[%s1379_s23] sm:$0xff]   ;;  %v1190_v19 = vld [vmem:[%s1572_s3 + $0x28] sm:$0xff]   ;;  %v1194_v23 = vld [vmem:[%s1572_s3 + $0x18] sm:$0xff]   ;;  %s1488_s17 = scalar_lea.vmem [#allocation2], %s1071_s14   ;;  %s1024_s20 = smul.u32 (%p1349_p4), 80, %s1337_s21 }
  0x18   : > { %v1191_v20 = vld [vmem:[%s1572_s3 + $0x60] sm:$0xff]   ;;  %v1181_v24 = vld [vmem:[%s1379_s23 + $0x8] sm:$0xff]   ;;  %v1183_v26 = vld [vmem:[%s1379_s23 + $0x18] sm:$0xff]   ;;  %p723_p8 = scmp.lt.s32.totalorder (%p1349_p4), %s722_s18, 10 }
  0x19   : > { %v1192_v21 = vld [vmem:[%s1572_s3 + $0x20] sm:$0xff]   ;;  %v1195_v28 = vld [vmem:[%s1572_s3 + $0x50] sm:$0xff]   ;;  %v1197_v30 = vld [vmem:[%s1572_s3 + $0x48] sm:$0xff]   ;;  %s1517_s28 = scalar_lea.vmem (%p1349_p4), %s1574_s5, %s1024_s20  }
  0x1a   : > { %391 = vmatpush1.bf16.msra.mxu0 %v1170_v6  ;;  %1028 = vmatpush3.bf16.msra.mxu1 %v1188_v15  ;;  %v1184_v27 = vld [vmem:[%s1379_s23 + $0x20] sm:$0xff]   ;;  %v1196_v29 = vld [vmem:[%s1572_s3 + $0x10] sm:$0xff]   ;;  %v1198_v31 = vld [vmem:[%s1572_s3 + $0x8] sm:$0xff]  }
  0x1b   : > { %392 = vmatprep.subr.bf16.mxu0 %v1171_v7  ;;  %1029 = vmatprep.subr.bf16.mxu1 %v1189_v16  ;;  %v1199_v32 = vld [vmem:[%s1572_s3 + $0x40] sm:$0xff]  }
  0x1c   : > { %v1200_v33 = vld [vmem:[%s1572_s3] sm:$0xff]  }
  0x1d   : > { %v269_v38 = vld [vmem:[%s1571_s2] sm:$0x3] }
  0x1e   : > { %393 = vmatpush1.bf16.msra.mxu0 %v1173_v8  ;;  %1030 = vmatpush3.bf16.msra.mxu1 %v1190_v19  ;;  %v1460_v40 = vrot.slane %v269_v38, %v277_v36  ;;  %v1462_v41 = vrot.slane %v269_v38, %v273_v37 }
  0x1f   : > { %394 = vmatprep.subr.bf16.mxu0 %v1174_v9  ;;  %1031 = vmatprep.subr.bf16.mxu1 %v1191_v20 }
  0x22   : > { %395 = vmatpush1.bf16.msra.mxu0 %v1176_v10  ;;  %1032 = vmatpush3.bf16.msra.mxu1 %v1192_v21 }
  0x23   : > { %396 = vmatprep.subr.bf16.mxu0 %v1177_v12  ;;  %1033 = vmatprep.subr.bf16.mxu1 %v1193_v22 }
  0x26   : > { %397 = vmatpush1.bf16.msra.mxu0 %v1179_v17  ;;  %1034 = vmatpush3.bf16.msra.mxu1 %v1194_v23 }
  0x27   : > { %1035 = vmatprep.subr.bf16.mxu1 %v1195_v28 }
  0x29   : > { %990 = vmatmul.mubr.msk.bf16.vlgmr.msra.gmra.mxu0 %vm366_vm0, %v1180_v18 }
  0x2a   : > { %424 = vmatprep.mubr.bf16.mxu0 %v1293_v2  ;;  %1036 = vmatpush3.bf16.msra.mxu1 %v1196_v29 }
  0x2b   : > { %1037 = vmatprep.subr.bf16.mxu1 %v1197_v30 }
  0x2e   : > { %1038 = vmatpush3.bf16.msra.mxu1 %v1198_v31 }
  0x2f   : > { %1039 = vmatprep.subr.bf16.mxu1 %v1199_v32 }
  0x31   : > { %991 = vmatmul.mubr.msk.bf16.gmra.mxu0 %vm366_vm0, %v1181_v24 }
  0x32   : > { %434 = vmatprep.mubr.bf16.mxu0 %v1293_v2  ;;  %1040 = vmatpush3.bf16.msra.mxu1 %v1200_v33 }
  0x39   : > { %992 = vmatmul.mubr.msk.bf16.gmra.mxu0 %vm366_vm0, %v1182_v25 }
  0x3a   : > { %444 = vmatprep.mubr.bf16.mxu0 %v1293_v2 }
  0x41   : > { %993 = vmatmul.mubr.msk.bf16.gmra.mxu0 %vm366_vm0, %v1183_v26 }
  0x42   : > { %454 = vmatprep.mubr.bf16.mxu0 %v1293_v2 }
  0x49   : > { %994 = vmatmul.mubr.msk.bf16.gmra.mxu0 %vm366_vm0, %v1184_v27 }
  0xe9   : > { %v416_v39 = vpop.f32.mrf.mxu0 }
  0xea   : > { %v417_v46 = vadd.f32 %v416_v39, %v1462_v41 }
  0xeb   : > { %v418_v42 = vpop.f32.mrf.mxu0 }
  0xec   : > { %v419_v44 = vadd.f32 %v418_v42, %v1460_v40  ;;  %v465_v53 = vmax.f32 %v417_v46, 0.0 }
  0xed   : > { %v420_v43 = vpop.f32.mrf.mxu0 }
  0xee   : > { %v421_v45 = vadd.f32 %v420_v43, %v1462_v41  ;;  %v466_v51 = vmax.f32 %v419_v44, 0.0 }
  0xef   : > { %v422_v47 = vpop.f32.mrf.mxu0 }
  0xf0   : > { %v423_v48 = vadd.f32 %v422_v47, %v1460_v40  ;;  %v467_v49 = vmax.f32 %v421_v45, 0.0 }
  0xf1   : > { %v426_v50 = vpop.f32.mrf.mxu0 }
  0xf2   : > { %v468_v52 = vmax.f32 %v423_v48, 0.0  ;;  %v485_v56 = vpack.c.bf16 %v467_v49, %v465_v53  ;;  %v427_v60 = vadd.f32 %v426_v50, %v1462_v41  ;;  %v995_v50 = vld [vmem:[%s1573_s4] ss:$0 sm:$0xff] }
  0xf3   : > { %v428_v54 = vpop.f32.mrf.mxu0 }
  0xf4   : > { %v486_v55 = vpack.c.bf16 %v468_v52, %v466_v51  ;;  %v429_v58 = vadd.f32 %v428_v54, %v1460_v40  ;;  %v469_v3 = vmax.f32 %v427_v60, 0.0 }
  0xf5   : > { %v430_v57 = vpop.f32.mrf.mxu0 }
  0xf6   : > { %v431_v59 = vadd.f32 %v430_v57, %v1462_v41  ;;  %662 = vmatprep.mubr.bf16.mxu1 %v486_v55  ;;  %v470_v1 = vmax.f32 %v429_v58, 0.0 }
  0xf7   : > { %v432_v61 = vpop.f32.mrf.mxu0  ;;  %663 = vmatmul.mubr.bf16.vlgmr.msra.gmra.mxu1 %v485_v56 }
  0xf8   : > { %v433_v62 = vadd.f32 %v432_v61, %v1460_v40  ;;  %v471_v63 = vmax.f32 %v431_v59, 0.0 }
  0xf9   : > { %v436_v0 = vpop.f32.mrf.mxu0 }
  0xfa   : > { %v472_v2 = vmax.f32 %v433_v62, 0.0  ;;  %v487_v6 = vpack.c.bf16 %v471_v63, %v469_v3  ;;  %v437_v10 = vadd.f32 %v436_v0, %v1462_v41 }
  0xfb   : > { %v438_v4 = vpop.f32.mrf.mxu0 }
  0xfc   : > { %v488_v5 = vpack.c.bf16 %v472_v2, %v470_v1  ;;  %v439_v8 = vadd.f32 %v438_v4, %v1460_v40  ;;  %v473_v17 = vmax.f32 %v437_v10, 0.0 }
  0xfd   : > { %v440_v7 = vpop.f32.mrf.mxu0 }
  0xfe   : > { %v441_v9 = vadd.f32 %v440_v7, %v1462_v41  ;;  %670 = vmatprep.mubr.bf16.mxu1 %v488_v5  ;;  %v474_v15 = vmax.f32 %v439_v8, 0.0 }
  0xff   : > { %v442_v11 = vpop.f32.mrf.mxu0  ;;  %671 = vmatmul.mubr.bf16.gmra.mxu1 %v487_v6 }
 0x100   : > { %v443_v12 = vadd.f32 %v442_v11, %v1460_v40  ;;  %v475_v13 = vmax.f32 %v441_v9, 0.0 }
 0x101   : > { %v446_v14 = vpop.f32.mrf.mxu0 }
 0x102   : > { %v476_v16 = vmax.f32 %v443_v12, 0.0  ;;  %v489_v20 = vpack.c.bf16 %v475_v13, %v473_v17  ;;  %v447_v24 = vadd.f32 %v446_v14, %v1462_v41 }
 0x103   : > { %v448_v18 = vpop.f32.mrf.mxu0 }
 0x104   : > { %v490_v19 = vpack.c.bf16 %v476_v16, %v474_v15  ;;  %v449_v22 = vadd.f32 %v448_v18, %v1460_v40  ;;  %v477_v31 = vmax.f32 %v447_v24, 0.0 }
 0x105   : > { %v450_v21 = vpop.f32.mrf.mxu0 }
 0x106   : > { %v451_v23 = vadd.f32 %v450_v21, %v1462_v41  ;;  %678 = vmatprep.mubr.bf16.mxu1 %v490_v19  ;;  %v478_v29 = vmax.f32 %v449_v22, 0.0 }
 0x107   : > { %v452_v25 = vpop.f32.mrf.mxu0  ;;  %679 = vmatmul.mubr.bf16.gmra.mxu1 %v489_v20 }
 0x108   : > { %v453_v26 = vadd.f32 %v452_v25, %v1460_v40  ;;  %v479_v27 = vmax.f32 %v451_v23, 0.0 }
 0x109   : > { %v456_v28 = vpop.f32.mrf.mxu0 }
 0x10a   : > { %v480_v30 = vmax.f32 %v453_v26, 0.0  ;;  %v491_v34 = vpack.c.bf16 %v479_v27, %v477_v31  ;;  %v457_v38 = vadd.f32 %v456_v28, %v1462_v41 }
 0x10b   : > { %v458_v32 = vpop.f32.mrf.mxu0 }
 0x10c   : > { %v492_v33 = vpack.c.bf16 %v480_v30, %v478_v29  ;;  %v459_v36 = vadd.f32 %v458_v32, %v1460_v40  ;;  %v481_v46 = vmax.f32 %v457_v38, 0.0 }
 0x10d   : > { %v460_v35 = vpop.f32.mrf.mxu0 }
 0x10e   : > { %v461_v37 = vadd.f32 %v460_v35, %v1462_v41  ;;  %686 = vmatprep.mubr.bf16.mxu1 %v492_v33  ;;  %v482_v44 = vmax.f32 %v459_v36, 0.0 }
 0x10f   : > { %v462_v39 = vpop.f32.mrf.mxu0  ;;  %687 = vmatmul.mubr.bf16.gmra.mxu1 %v491_v34 }
 0x110   : > { %v463_v42 = vadd.f32 %v462_v39, %v1460_v40  ;;  %v483_v43 = vmax.f32 %v461_v37, 0.0 }
 0x112   : > { %v484_v45 = vmax.f32 %v463_v42, 0.0  ;;  %v493_v48 = vpack.c.bf16 %v483_v43, %v481_v46 }
 0x114   : > { %v494_v47 = vpack.c.bf16 %v484_v45, %v482_v44 }
 0x116   : > { %694 = vmatprep.mubr.bf16.mxu1 %v494_v47 }
 0x117   : > { %695 = vmatmul.mubr.bf16.gmra.mxu1 %v493_v48 }
 0x1b7   : > { %v1041_v49 = vpop.f32.mrf.mxu1 }
 0x1b9   : > { %v1042_v41 = vpop.f32.mrf.mxu1 }
 0x1ba   : > { %v1043_v51 = vadd.f32 %v1042_v41, %v1041_v49 }
 0x1bb   : > { %v1044_v52 = vpop.f32.mrf.mxu1 }
 0x1bc   : > { %v665_v40 = vadd.f32 %v1043_v51, %v995_v50 }
 0x1bd   : > { %v1045_v53 = vpop.f32.mrf.mxu1 }
 0x1be   : > { %704 = vst.msk [vmem:[%s1488_s17] sm:$0xff] %vm703_vm1, %v665_v40  ;;  %v1046_v54 = vadd.f32 %v1045_v53, %v1044_v52 }
 0x1bf   : > { %v1047_v55 = vpop.f32.mrf.mxu1 }
 0x1c0   : > { %v668_v56 = vadd.f32 %v1046_v54, %v995_v50 }
 0x1c1   : > { %v1048_v57 = vpop.f32.mrf.mxu1 }
 0x1c2   : > { %705 = vst.msk [vmem:[%s1488_s17 + $0x8] sm:$0xff] %vm703_vm1, %v668_v56  ;;  %v1049_v58 = vadd.f32 %v1048_v57, %v1047_v55 }
 0x1c3   : > { %v1050_v59 = vpop.f32.mrf.mxu1 }
 0x1c4   : > { %v673_v60 = vadd.f32 %v1049_v58, %v995_v50 }
 0x1c5   : > { %v1051_v61 = vpop.f32.mrf.mxu1 }
 0x1c6   : > { %706 = vst.msk [vmem:[%s1488_s17 + $0x10] sm:$0xff] %vm703_vm1, %v673_v60  ;;  %v1052_v62 = vadd.f32 %v1051_v61, %v1050_v59 }
 0x1c7   : > { %v1053_v63 = vpop.f32.mrf.mxu1 }
 0x1c8   : > { %v676_v0 = vadd.f32 %v1052_v62, %v995_v50 }
 0x1c9   : > { %v1054_v1 = vpop.f32.mrf.mxu1 }
 0x1ca   : > { %707 = vst.msk [vmem:[%s1488_s17 + $0x18] sm:$0xff] %vm703_vm1, %v676_v0  ;;  %v1055_v2 = vadd.f32 %v1054_v1, %v1053_v63 }
 0x1cb   : > { %v1056_v3 = vpop.f32.mrf.mxu1 }
 0x1cc   : > { %v681_v4 = vadd.f32 %v1055_v2, %v995_v50 }
 0x1cd   : > { %v1057_v5 = vpop.f32.mrf.mxu1 }
 0x1ce   : > { %708 = vst.msk [vmem:[%s1488_s17 + $0x20] sm:$0xff] %vm703_vm1, %v681_v4  ;;  %v1058_v6 = vadd.f32 %v1057_v5, %v1056_v3 }
 0x1cf   : > { %v1059_v7 = vpop.f32.mrf.mxu1 }
 0x1d0   : > { %v684_v8 = vadd.f32 %v1058_v6, %v995_v50 }
 0x1d1   : > { %v1060_v9 = vpop.f32.mrf.mxu1 }
 0x1d2   : > { %709 = vst.msk [vmem:[%s1488_s17 + $0x28] sm:$0xff] %vm703_vm1, %v684_v8  ;;  %v1061_v10 = vadd.f32 %v1060_v9, %v1059_v7 }
 0x1d3   : > { %v1062_v11 = vpop.f32.mrf.mxu1 }
 0x1d4   : > { %v689_v12 = vadd.f32 %v1061_v10, %v995_v50 }
 0x1d5   : > { %v1063_v13 = vpop.f32.mrf.mxu1 }
 0x1d6   : > { %710 = vst.msk [vmem:[%s1488_s17 + $0x30] sm:$0xff] %vm703_vm1, %v689_v12  ;;  %v1064_v14 = vadd.f32 %v1063_v13, %v1062_v11 }
 0x1d7   : > { %v1065_v15 = vpop.f32.mrf.mxu1 }
 0x1d8   : > { %v692_v16 = vadd.f32 %v1064_v14, %v995_v50 }
 0x1d9   : > { %v1066_v17 = vpop.f32.mrf.mxu1 }
 0x1da   : > { %711 = vst.msk [vmem:[%s1488_s17 + $0x38] sm:$0xff] %vm703_vm1, %v692_v16  ;;  %v1067_v18 = vadd.f32 %v1066_v17, %v1065_v15 }
 0x1db   : > { %v1068_v19 = vpop.f32.mrf.mxu1 }
 0x1dc   : > { %v697_v20 = vadd.f32 %v1067_v18, %v995_v50 }
 0x1dd   : > { %v1069_v21 = vpop.f32.mrf.mxu1 }
 0x1de   : > { %712 = vst.msk [vmem:[%s1488_s17 + $0x40] sm:$0xff] %vm703_vm1, %v697_v20  ;;  %v1070_v22 = vadd.f32 %v1069_v21, %v1068_v19  ;;  %720 = sbr.rel (!%p1349_p4) target bundleno = 536 (0x218), region = 44 }
 0x1e0   : > { %v700_v23 = vadd.f32 %v1070_v22, %v995_v50 }
 0x1e2   : > { %713 = vst.msk [vmem:[%s1488_s17 + $0x48] sm:$0xff] %vm703_vm1, %v700_v23 }
 0x1e3   : > { %s1583_s18 = smov (!%p723_p8, %s722_s18), 10 }
 0x1e4   : > { %s1012_s30 = sshll.u32 %s1583_s18, 7 }
 0x1e5   : > { %p1015_p9 = scmp.eq.s32.totalorder %s1012_s30, 0 }
 0x1e6   : > { %1201 = sdivrem.u32 (!%p1015_p9), %s1583_s18, 10 }
 0x1e7   : > { %731 = sbr.rel (%p1015_p9) target bundleno = 536 (0x218), region = 48 }
 0x1ef   : > { %s1523_s26 = spop.drf %1201 }
 0x1f0   : > { %p1016_p10 = scmp.le.s32.totalorder %s1523_s26, 0 }
 0x1f1   : > { %s1576_s21 = smov (!%p1016_p10), %s1517_s28  ;;  %s1577_s29 = smov (!%p1016_p10), %s1488_s17 }
 0x1f2   : > { %924 = sbr.rel (%p1016_p10) target bundleno = 511 (0x1ff), region = 124  ;;  %s1532_s6 = smov (!%p1016_p10), 0  }
 0x1f3   : > { %s1534_s7 = smov (!%p1016_p10), 0  }
 0x1f7 LB: >> { %v814_v24 = vld [vmem:[%s1267_s29] sm:$0xff]  ;;  %v816_v25 = vld [vmem:[%s1267_s29 + $0x8] sm:$0xff]  ;;  %v818_v26 = vld [vmem:[%s1267_s29 + $0x10] sm:$0xff]  ;;  %s834_s23 = sadd.s32 1, %s1271_s6  ;;  %s808_s7 = sadd.s32 1, %s1275_s7   ;;  %s1275_s7 = sphi %s1534_s7, %s808_s7   ;;  %s1271_s6 = sphi %s1532_s6, %s1578_s6   ;;  %s1267_s29 = sphi %s1577_s29, %s839_s29   ;;  %s1263_s21 = sphi %s1576_s21, %s840_s21  }
 0x1f8   : >> { %815 = vst [vmem:[%s1263_s21] sm:$0xff] %v814_v24  ;;  %817 = vst [vmem:[%s1263_s21 + $0x8] sm:$0xff] %v816_v25  ;;  %v820_v27 = vld [vmem:[%s1267_s29 + $0x18] sm:$0xff]  ;;  %v822_v28 = vld [vmem:[%s1267_s29 + $0x20] sm:$0xff]  ;;  %p835_p11 = scmp.ge.s32.totalorder %s834_s23, %s1523_s26  ;;  %p807_p12 = scmp.ge.s32.totalorder %s808_s7, %s1523_s26 }
 0x1f9   : >> { %819 = vst [vmem:[%s1263_s21 + $0x10] sm:$0xff] %v818_v26  ;;  %v824_v29 = vld [vmem:[%s1267_s29 + $0x28] sm:$0xff]  ;;  %821 = vst [vmem:[%s1263_s21 + $0x18] sm:$0xff] %v820_v27  ;;  %v826_v30 = vld [vmem:[%s1267_s29 + $0x30] sm:$0xff] }
 0x1fa   : >> { %823 = vst [vmem:[%s1263_s21 + $0x20] sm:$0xff] %v822_v28  ;;  %825 = vst [vmem:[%s1263_s21 + $0x28] sm:$0xff] %v824_v29  ;;  %v828_v31 = vld [vmem:[%s1267_s29 + $0x38] sm:$0xff]  ;;  %v830_v32 = vld [vmem:[%s1267_s29 + $0x40] sm:$0xff]  ;;  %s1585_s23 = smov (%p835_p11, %s834_s23), 0  ;;  %810 = sbr.rel (!%p807_p12) target bundleno = 503 (0x1f7), region = 130 }
 0x1fb   : >> { %827 = vst [vmem:[%s1263_s21 + $0x30] sm:$0xff] %v826_v30  ;;  %829 = vst [vmem:[%s1263_s21 + $0x38] sm:$0xff] %v828_v31  ;;  %v832_v33 = vld [vmem:[%s1267_s29 + $0x48] sm:$0xff]  ;;  %s837_s8 = smul.u32 80, %s1585_s23  ;;  %s1578_s6 = smov %s1585_s23 }
 0x1fc   : >> { %831 = vst [vmem:[%s1263_s21 + $0x40] sm:$0xff] %v830_v32  ;;  %833 = vst [vmem:[%s1263_s21 + $0x48] sm:$0xff] %v832_v33 }
 0x1fd   : >> { %s839_s29 = scalar_lea.vmem %s1488_s17, %s837_s8 [#allocation2]   ;;  %s840_s21 = scalar_lea.vmem %s1517_s28, %s837_s8  }
 0x1ff PF: > { %1203 = sdivrem.u32 %s1583_s18, 10 }
 0x200   : > { %s1017_s9 = smul.u32 80, %s1523_s26 }
 0x202   : > { %s845_s10 = scalar_lea.vmem %s1488_s17, %s1017_s9 [#allocation2]   ;;  %s847_s11 = scalar_lea.vmem %s1517_s28, %s1017_s9  }
 0x208   : > { %s1204_s12 = spop.drf %1203 }
 0x209   : > { %p1019_p13 = scmp.le.s32.totalorder %s1204_s12, 0 }
 0x20a   : > { %s1277_s13 = smov (!%p1019_p13), %s847_s11   ;;  %s1281_s14 = smov (!%p1019_p13), %s845_s10  }
 0x20b   : > { %938 = sbr.rel (%p1019_p13) target bundleno = 536 (0x218), region = 135  ;;  %s1285_s15 = smov (!%p1019_p13), 0  }
 0x20c   : > { %s1289_s16 = smov (!%p1019_p13), 0  }
 0x210 LB: >> { %v857_v34 = vld [vmem:[%s1283_s14] sm:$0xff]  ;;  %s859_s20 = sadd.s32 1, %s1287_s15  ;;  %s851_s16 = sadd.s32 1, %s1291_s16   ;;  %s1291_s16 = sphi %s1289_s16, %s851_s16   ;;  %s1287_s15 = sphi %s1285_s15, %s1286_s15   ;;  %s1283_s14 = sphi %s1281_s14, %s864_s14   ;;  %s1279_s13 = sphi %s1277_s13, %s865_s13  }
 0x211   : >> { %858 = vst [vmem:[%s1279_s13] sm:$0xff] %v857_v34  ;;  %p860_p0 = scmp.ge.s32.totalorder %s859_s20, %s1204_s12  ;;  %p850_p1 = scmp.ge.s32.totalorder %s851_s16, %s1204_s12 }
 0x213   : >> { %s1587_s20 = smov (%p860_p0, %s859_s20), 0  ;;  %853 = sbr.rel (!%p850_p1) target bundleno = 528 (0x210), region = 141 }
 0x214   : >> { %s1020_s17 = sshll.u32 %s1587_s20, 3  ;;  %s1286_s15 = smov %s1587_s20  }
 0x215   : >> { %s864_s14 = scalar_lea.vmem %s845_s10, %s1020_s17 [#allocation2]   ;;  %s865_s13 = scalar_lea.vmem %s847_s11, %s1020_s17  }
 0x218 PF: > { %p12_p2 = scmp.ge.s32.totalorder %s1339_s22, 6   ;;  %s1579_s18 = smov %s1255_s19 }
 0x219   : > { %s1580_s19 = smov %s1347_s25  ;;  %s1581_s20 = smov %s1339_s22 }
 0x21a   :  { %14 = sbr.rel (!%p12_p2) target bundleno = 2 (0x2), region = 152 }

</bundles_post_ra>
